<compile_context>
chip_gen: v7x
topology: tpu7x:2x2x1
jax: 0.10.0
libtpu: 0.0.40
codegen_flags: <defaults>
</compile_context>

<pallas_src>
import jax
import jax.numpy as jnp
from jax.experimental import pallas as pl
from jax.experimental.pallas import tpu as pltpu


# --------------------------------- kernel ---------------------------------
def upsample2x_kernel(x_ref, w_ref, b_ref, o_ref):
    """relu( W(C4,Cin) @ x(Cin,TM) + b(C4,1) ) for one spatial row-tile."""
    y = jnp.dot(w_ref[...], x_ref[...],
                preferred_element_type=jnp.float32,
                precision=jax.lax.Precision.HIGHEST)
    o_ref[...] = jnp.maximum(y + b_ref[...], 0.0)


# Rows (spatial positions) per tile.  ~6 MiB double-buffered VMEM at
# Cin=64 / C4=128 f32, safe on v5e's 16 MiB scoped default and v7x's 64 MiB.
_TARGET_TM = 4096


# --------------------------------- wrapper --------------------------------
def upsampling2x_pallas(x_nchw, params):
    """x_nchw: (B, Cin, H, W) float32 -> (B, Cout, 2H, 2W) float32."""
    x = x_nchw.astype(jnp.float32)
    B, Cin, H, W = x.shape
    HW = H * W

    w = params['conv_w'].astype(jnp.float32)                 # (4*Cout, Cin), 1x1 conv
    C4 = w.shape[0]
    Cout = C4 // 4
    # Fold BN scale into the conv weight rows (exact: conv is bias-free).
    w_folded = w * params['bn_scale'].astype(jnp.float32)[:, None]    # (C4, Cin)
    bias = params['bn_bias'].astype(jnp.float32).reshape(C4, 1)       # (C4, 1)

    # Large lane-dense row tile; cdiv grid handles a partial edge tile.  Each
    # output column depends only on the matching input column, so any padded
    # columns in the edge tile are simply masked on writeback.
    TM = _TARGET_TM if HW >= _TARGET_TM else HW
    x_flat = x.reshape(B, Cin, HW)            # free reshape, stays NCHW in HBM

    y = pl.pallas_call(
        upsample2x_kernel,
        out_shape=jax.ShapeDtypeStruct((B, C4, HW), jnp.float32),
        grid=(B, pl.cdiv(HW, TM)),
        in_specs=[
            pl.BlockSpec((None, Cin, TM), lambda b, m: (b, 0, m)),   # activations
            pl.BlockSpec((C4, Cin), lambda b, m: (0, 0)),            # scaled weight
            pl.BlockSpec((C4, 1), lambda b, m: (0, 0)),              # folded BN bias
        ],
        out_specs=pl.BlockSpec((None, C4, TM), lambda b, m: (b, 0, m)),
        compiler_params=pltpu.CompilerParams(
            dimension_semantics=("parallel", "parallel")),
    )(x_flat, w_folded, bias)

    # PixelShuffle(2): conv channel t = c*4 + i*2 + j  ->  out[b, c, 2h+i, 2w+j]
    y = y.reshape(B, Cout, 2, 2, H, W)
    out = y.transpose(0, 1, 4, 2, 5, 3).reshape(B, Cout, 2 * H, 2 * W)
    return out


# ----------------- deterministic parameter construction -------------------
def make_params(key, in_chs, out_chs):
    temp = out_chs * 4
    k1, kg, kb, km, kv = jax.random.split(key, 5)
    conv_w = jax.random.normal(k1, (temp, in_chs), jnp.float32) / jnp.sqrt(
        jnp.float32(in_chs))
    eps = 1e-5
    gamma = jax.random.normal(kg, (temp,), jnp.float32) * 0.1 + 1.0
    beta = jax.random.normal(kb, (temp,), jnp.float32) * 0.1
    mean = jax.random.normal(km, (temp,), jnp.float32) * 0.1
    var = jnp.abs(jax.random.normal(kv, (temp,), jnp.float32)) * 0.1 + 0.5
    scale = gamma / jnp.sqrt(var + eps)
    bias = beta - mean * scale
    return {'conv_w': conv_w, 'bn_scale': scale, 'bn_bias': bias}


# ------------------------- pure-JAX reference (NCHW) ----------------------
def upsampling2x_reference(x_nchw, params):
    w = params['conv_w']                                    # (4*Cout, Cin)
    y = jnp.einsum('bihw,oi->bohw', x_nchw, w,
                   precision=jax.lax.Precision.HIGHEST)
    y = y * params['bn_scale'][None, :, None, None] \
        + params['bn_bias'][None, :, None, None]
    y = jnp.maximum(y, 0.0)
    B, C4, H, W = y.shape
    C = C4 // 4
    y = y.reshape(B, C, 2, 2, H, W).transpose(0, 1, 4, 2, 5, 3)
    return y.reshape(B, C, 2 * H, 2 * W)


if __name__ == "__main__":
    B, in_chs, out_chs, H, W = 2, 64, 32, 16, 16   # temp_chs = 128 -> lane-dense
    key = jax.random.PRNGKey(0)
    kx, kp = jax.random.split(key)
    x = jax.random.normal(kx, (B, in_chs, H, W), jnp.float32)
    params = make_params(kp, in_chs, out_chs)

    out = upsampling2x_pallas(x, params)
    out = jax.block_until_ready(out)
    assert out.shape == (B, out_chs, 2 * H, 2 * W)

    ref = upsampling2x_reference(x, params)
    err = float(jnp.max(jnp.abs(out - ref)))
    if not err < 1e-3:
        raise AssertionError(f"mismatch vs reference: max abs err {err}")
    print("KERNEL_OK")
</pallas_src>

<mosaic_0001>
module attributes {stable_mosaic.version = 11 : i64} {
  func.func @upsample2x_kernel(%arg0: i32, %arg1: i32, %arg2: memref<1x64x256xf32, #tpu.memory_space<vmem>>, %arg3: memref<128x64xf32, #tpu.memory_space<vmem>>, %arg4: memref<128x1xf32, #tpu.memory_space<vmem>>, %arg5: memref<1x128x256xf32, #tpu.memory_space<vmem>>) attributes {dimension_semantics = [#tpu.dimension_semantics<parallel>, #tpu.dimension_semantics<parallel>], iteration_bounds = array<i64: 2, 1>, scalar_prefetch = 0 : i64, scratch_operands = 0 : i64, tpu.core_type = #tpu.core_type<tc>, window_params = [{transform_indices = @transform_0, window_bounds = array<i64: 1, 64, 256>}, {pipeline_mode = #tpu.pipeline_mode<synchronous>, transform_indices = @transform_1, window_bounds = array<i64: 128, 64>}, {pipeline_mode = #tpu.pipeline_mode<synchronous>, transform_indices = @transform_2, window_bounds = array<i64: 128, 1>}, {transform_indices = @transform_3, window_bounds = array<i64: 1, 128, 256>}]} {
    %c0 = arith.constant 0 : index
    %c0_0 = arith.constant 0 : index
    %0 = vector.load %arg3[%c0, %c0_0] : memref<128x64xf32, #tpu.memory_space<vmem>>, vector<128x64xf32>
    %c0_1 = arith.constant 0 : index
    %c0_2 = arith.constant 0 : index
    %c0_3 = arith.constant 0 : index
    %1 = vector.load %arg2[%c0_1, %c0_2, %c0_3] : memref<1x64x256xf32, #tpu.memory_space<vmem>>, vector<1x64x256xf32>
    %2 = vector.shape_cast %1 : vector<1x64x256xf32> to vector<64x256xf32>
    %cst = arith.constant dense<0.000000e+00> : vector<128x256xf32>
    %3 = tpu.matmul %0, %2, %cst {dimension_numbers = #tpu.dot_dimension_numbers<[1], [0], [0], [1], [0, 0, 1, 1], [], []>, precision = #tpu.contract_precision<fp32>} : vector<128x64xf32>, vector<64x256xf32>, vector<128x256xf32> -> vector<128x256xf32>
    %c0_4 = arith.constant 0 : index
    %c0_5 = arith.constant 0 : index
    %4 = vector.load %arg4[%c0_4, %c0_5] : memref<128x1xf32, #tpu.memory_space<vmem>>, vector<128x1xf32>
    %5 = vector.broadcast %4 : vector<128x1xf32> to vector<128x256xf32>
    %6 = arith.addf %3, %5 : vector<128x256xf32>
    %cst_6 = arith.constant 0.000000e+00 : f32
    %7 = vector.broadcast %cst_6 : f32 to vector<128x256xf32>
    %8 = arith.maximumf %6, %7 : vector<128x256xf32>
    %c0_7 = arith.constant 0 : index
    %c0_8 = arith.constant 0 : index
    %c0_9 = arith.constant 0 : index
    %9 = vector.load %arg5[%c0_7, %c0_8, %c0_9] : memref<1x128x256xf32, #tpu.memory_space<vmem>>, vector<1x128x256xf32>
    %10 = vector.shape_cast %9 : vector<1x128x256xf32> to vector<128x256xf32>
    %11 = vector.shape_cast %8 : vector<128x256xf32> to vector<1x128x256xf32>
    tpu.vector_store %arg5[%c0_7, %c0_8, %c0_9], %11 {strides = array<i32>} : memref<1x128x256xf32, #tpu.memory_space<vmem>>, vector<1x128x256xf32>,
    return
  }
  func.func @transform_0(%arg0: i32, %arg1: i32) -> (i32, i32, i32) {
    %c0_i32 = arith.constant 0 : i32
    %c0_i32_0 = arith.constant 0 : i32
    return %arg0, %c0_i32, %arg1 : i32, i32, i32
  }
  func.func @transform_1(%arg0: i32, %arg1: i32) -> (i32, i32) {
    %c0_i32 = arith.constant 0 : i32
    %c0_i32_0 = arith.constant 0 : i32
    %c0_i32_1 = arith.constant 0 : i32
    return %c0_i32, %c0_i32_0 : i32, i32
  }
  func.func @transform_2(%arg0: i32, %arg1: i32) -> (i32, i32) {
    %c0_i32 = arith.constant 0 : i32
    %c0_i32_0 = arith.constant 0 : i32
    %c0_i32_1 = arith.constant 0 : i32
    return %c0_i32, %c0_i32_0 : i32, i32
  }
  func.func @transform_3(%arg0: i32, %arg1: i32) -> (i32, i32, i32) {
    %c0_i32 = arith.constant 0 : i32
    %c0_i32_0 = arith.constant 0 : i32
    return %arg0, %c0_i32, %arg1 : i32, i32, i32
  }
}

</mosaic_0001>

<bundles_post_ra>
// kernel: tpu_custom_call.1
= control target key start
LH: loop header
LB: loop body
LE: loop exit
PB: predicated region body
PF: predicated region fallthrough
CT: control target
= control target key end

     0   :  { %8 = vsyncpa [#allocation3], 0  ;;  %s3158_s0 = inlined_call_operand.vmem [shape: f32[2,64,256], index: 0, kind: input, shape index: {}]   ;;  %s3159_s1 = inlined_call_operand.vmem [shape: f32[128,64], index: 1, kind: input, shape index: {}]   ;;  %s3160_s2 = inlined_call_operand.vmem [shape: f32[128,1], index: 2, kind: input, shape index: {}]   ;;  %s3161_s3 = inlined_call_operand.hbm [shape: f32[2,128,256], index: 3, kind: output, shape index: {}]  }
   0x1   :  { %10 = vsyncpa [#allocation3 + $0x1], 0  ;;  %s2387_s12 = smov 0   ;;  %s2389_s13 = smov 0  }
   0x2   :  { %s2391_s14 = smov 0   ;;  %s2393_s15 = smov 0  }
   0x3   :  { %s2395_s16 = smov 0   ;;  %s2397_s17 = smov 0  }
   0x4 LB: > { %s1918_s18 = sadd.s32 4294967295, %s2360_s17   ;;  %s1919_s19 = sadd.s32 4294967294, %s2360_s17   ;;  %s2360_s17 = sphi %s2397_s17, %s16_s17   ;;  %s2356_s16 = sphi %s2395_s16, %s3197_s16   ;;  %s2352_s15 = sphi %s2393_s15, %s3196_s15   ;;  %s2348_s14 = sphi %s2391_s14, %s3195_s14   ;;  %s2344_s13 = sphi %s2389_s13, %s3194_s13   ;;  %s2340_s12 = sphi %s2387_s12, %s3193_s12  }
   0x5   : > { %s28_s20 = sadd.s32 1, %s2356_s16  ;;  %s107_s21 = sadd.s32 1, %s2348_s14 }
   0x6   : > { %p30_p0 = scmp.ge.s32.totalorder %s28_s20, 2  ;;  %p117_p1 = scmp.ne.s32.totalorder %s2348_s14, %s2344_s13 }
   0x7   : > { %p118_p2 = scmp.eq.s32.totalorder %s1918_s18, 1  ;;  %p123_p3 = scmp.ne.s32.totalorder %s2344_s13, %s2340_s12 }
   0x8   : > { %s3199_s20 = smov (%p30_p0, %s28_s20), 0  ;;  %p124_p5 = scmp.eq.s32.totalorder %s1919_s19, 1 }
   0x9   : > { %p2427_p4 = por %p118_p2, %p117_p1  ;;  %s102_s23 = ssub.s32 %s2356_s16, %s3199_s20 }
   0xa   : > { %p1922_p6 = scmp.ge.s32.totalorder %s2360_s17, 1  ;;  %p105_p7 = scmp.eq.s32.totalorder %s102_s23, 0 }
   0xb   : > { %p2434_p8 = por %p124_p5, %p123_p3  ;;  %p161_p9 = scmp.lt.s32.totalorder %s2360_s17, 3 }
   0xc   : > { %s2440_s25 = scalar_select %p105_p7, %s2348_s14, %s107_s21  }
   0xd   : > { %p162_p10 = pnand %p1922_p6, %p161_p9 }
   0xf   : > { %165 = sbr.rel (%p162_p10) target bundleno = 471 (0x1d7), region = 32 }
  0x16   : > { %p190_p11 = scmp.lt.s32.totalorder %s2352_s15, 1  ;;  %v200_v0 = vld [vmem:[%s3159_s1] sm:$0xff]  ;;  %vm328_vm0 = vcmask 523264   ;;  %v201_v1 = vld [vmem:[%s3159_s1 + $0x8] sm:$0xff]  ;;  %v202_v2 = vld [vmem:[%s3159_s1 + $0x10] sm:$0xff]  ;;  %v3163_v3 = vmov 0.0  }
  0x17   : > { %457 = vmatprep.mubr.f32.mxu1 %v3163_v3  ;;  %1196 = vmatprep.mubr.f32.mxu0 %v3163_v3  ;;  %v330_v4 = vsel %vm328_vm0, %v200_v0, 0  ;;  %v203_v5 = vld [vmem:[%s3159_s1 + $0x18] sm:$0xff]  ;;  %v333_v7 = vsel %vm328_vm0, %v201_v1, 0  ;;  %v336_v8 = vsel %vm328_vm0, %v202_v2, 0  ;;  %v204_v10 = vld [vmem:[%s3159_s1 + $0x20] sm:$0xff]  ;;  %v205_v11 = vld [vmem:[%s3159_s1 + $0x28] sm:$0xff] }
  0x18   : > { %s191_s7 = scalar_select %p190_p11, %s2352_s15, 1  ;;  %v2459_v6 = vand.u32 4294901760, %v330_v4  ;;  %v339_v9 = vsel %vm328_vm0, %v203_v5, 0  ;;  %v2475_v12 = vand.u32 4294901760, %v333_v7  ;;  %v2477_v13 = vand.u32 4294901760, %v336_v8  ;;  %v206_v14 = vld [vmem:[%s3159_s1 + $0x30] sm:$0xff] }
  0x19   : > { %v2488_v19 = vand.u32 4294901760, %v339_v9  ;;  %v342_v20 = vsel %vm328_vm0, %v204_v10, 0  ;;  %v2492_v21 = vsel %vm328_vm0, %v205_v11, 0  ;;  %v2517_v40 = vsel %vm328_vm0, %v206_v14, 0  ;;  %s186_s27 = sand.u32 1, %s2344_s13   ;;  %s1932_s30 = sshll.u32 %s2352_s15, 12 }
  0x1a   : > { %s1931_s18 = sshll.u32 %s191_s7, 7  ;;  %v2486_v18 = vsub.f32 %v330_v4, %v2459_v6  ;;  %v2512_v38 = vsub.f32 %v333_v7, %v2475_v12  ;;  %v2514_v39 = vand.u32 4294901760, %v342_v20  ;;  %v2560_v62 = vsub.f32 %v336_v8, %v2477_v13  ;;  %s1923_s28 = sshll.u32 %s186_s27, 8 }
  0x1b   : > { %s2473_s23 = scalar_lea.vmem %s3158_s0, %s1931_s18  ;;  %v2563_v63 = vsub.f32 %v339_v9, %v2488_v19  ;;  %v2566_v0 = vand.u32 4294901760, %v2492_v21  ;;  %v2576_v5 = vand.u32 4294901760, %v2517_v40  ;;  %s3067_s29 = scalar_lea.vmem [#allocation2], %s1923_s28 }
  0x1c   : > { %v217_v15 = vld [vmem:[%s2473_s23 + $0x8] sm:$0xff]  ;;  %v219_v16 = vld [vmem:[%s2473_s23 + $0x18] sm:$0xff]  ;;  %v216_v17 = vld [vmem:[%s2473_s23] sm:$0xff]  ;;  %3176 = vst [vmem:[#allocation5_spill] sm:$0xff] %v2512_v38  ;;  %v460_v46 = vand.u32 4294901760, %v2486_v18  ;;  %v3166_v2 = vand.u32 4294901760, %v2512_v38  ;;  %v2573_v4 = vsub.f32 %v342_v20, %v2514_v39  ;;  %s3104_s7 = scalar_lea.hbm %s3161_s3, %s1932_s30 }
  0x1d   : > { %v377_v22 = vand.u32 4294901760, %v217_v15  ;;  %v381_v23 = vand.u32 4294901760, %v219_v16  ;;  %v218_v24 = vld [vmem:[%s2473_s23 + $0x10] sm:$0xff]  ;;  %v379_v25 = vand.u32 4294901760, %v216_v17  ;;  %v221_v26 = vld [vmem:[%s2473_s23 + $0x28] sm:$0xff]  ;;  %v223_v27 = vld [vmem:[%s2473_s23 + $0x38] sm:$0xff] }
  0x1e   : > { %v383_v28 = vand.u32 4294901760, %v218_v24  ;;  %v385_v29 = vand.u32 4294901760, %v221_v26  ;;  %v389_v30 = vand.u32 4294901760, %v223_v27  ;;  %v220_v31 = vld [vmem:[%s2473_s23 + $0x20] sm:$0xff]  ;;  %v222_v32 = vld [vmem:[%s2473_s23 + $0x30] sm:$0xff]  ;;  %v225_v33 = vld [vmem:[%s2473_s23 + $0x48] sm:$0xff]  ;;  %v461_v1 = vsub.f32 %v2486_v18, %v460_v46 }
  0x1f   : > { %v2500_v34 = vpack.c.bf16 %v381_v23, %v377_v22  ;;  %v2503_v35 = vld [vmem:[%s2473_s23 + $0x58] sm:$0xff]  ;;  %v2506_v36 = vld [vmem:[%s2473_s23 + $0x40] sm:$0xff]  ;;  %v2509_v37 = vld [vmem:[%s2473_s23 + $0x50] sm:$0xff]  ;;  %v2519_v41 = vsub.f32 %v217_v15, %v377_v22  ;;  %v2533_v47 = vsub.f32 %v219_v16, %v381_v23  ;;  %v387_v48 = vand.u32 4294901760, %v220_v31  ;;  %3177 = vst [vmem:[#allocation6_spill] sm:$0xff] %v2560_v62  ;;  %s1839_s4 = sshll.u32 %s3067_s29, 4  ;;  %s3106_s4 = int_to_ptr.vmem [resolvable:$true] %s1839_s4 }
  0x20   : > { %v2521_v42 = vpack.c.bf16 %v383_v28, %v379_v25  ;;  %v2523_v43 = vpack.c.bf16 %v389_v30, %v385_v29  ;;  %v2526_v44 = vld [vmem:[%s2473_s23 + $0x68] sm:$0xff]  ;;  %v2529_v45 = vld [vmem:[%s2473_s23 + $0x78] sm:$0xff]  ;;  %v391_v49 = vand.u32 4294901760, %v222_v32  ;;  %v393_v50 = vand.u32 4294901760, %v225_v33  ;;  %v2552_v59 = vld [vmem:[%s2473_s23 + $0x60] sm:$0xff]  ;;  %3178 = vst [vmem:[#allocation7_spill] sm:$0xff] %v2563_v63 }
  0x21   : > { %1934 = vmatprep.subr.bf16.mxu1 %v2500_v34  ;;  %1982 = vmatprep.subr.bf16.mxu0 %v2500_v34  ;;  %v397_v51 = vand.u32 4294901760, %v2503_v35  ;;  %v395_v52 = vand.u32 4294901760, %v2506_v36  ;;  %v399_v53 = vand.u32 4294901760, %v2509_v37  ;;  %v401_v54 = vand.u32 4294901760, %v2526_v44  ;;  %v2555_v60 = vld [vmem:[%s2473_s23 + $0x70] sm:$0xff]  ;;  %3179 = vst [vmem:[#allocation8_spill] sm:$0xff] %v2573_v4 }
  0x22   : > { %1936 = vmatpush1.bf16.msra.mxu1 %v2521_v42  ;;  %1984 = vmatpush1.bf16.msra.mxu0 %v2521_v42  ;;  %v2542_v55 = vsub.f32 %v216_v17, %v379_v25  ;;  %v2544_v56 = vsub.f32 %v218_v24, %v383_v28  ;;  %v2548_v57 = vpack.c.bf16 %v391_v49, %v387_v48  ;;  %v3162_v58 = vand.u32 4294901760, %v2529_v45  ;;  %s3112_s15 = scalar_lea.sflag [#allocation3], %s186_s27  ;;  %s2282_s8 = scalar_lea.vmem %s3106_s4, 4096 }
  0x23   : > { %1938 = vmatprep.subr.bf16.mxu1 %v2523_v43  ;;  %1986 = vmatprep.subr.bf16.mxu0 %v2523_v43  ;;  %v2557_v61 = vpack.c.bf16 %v397_v51, %v393_v50  ;;  %v2580_v7 = vpack.c.bf16 %v399_v53, %v395_v52  ;;  %v403_v9 = vand.u32 4294901760, %v2552_v59  ;;  %v3165_v10 = vand.u32 4294901760, %v2555_v60  ;;  %p2283_p12 = scmp.ne.s32.totalorder %s3106_s4, %s2282_s8  ;;  %s2364_s9 = smov [#allocation2]  }
  0x24   : > { %v2586_v8 = vpack.c.bf16 %v3162_v58, %v401_v54  ;;  %v636_v11 = vand.u32 4294901760, %v2519_v41  ;;  %v648_v14 = vand.u32 4294901760, %v2533_v47  ;;  %v642_v15 = vand.u32 4294901760, %v2542_v55  ;;  %s2286_s10 = sshll.u32 %s2364_s9, 4  ;;  %s2287_s10 = int_to_ptr.vmem [resolvable:$false] %s2286_s10 }
  0x25   : > { %v654_v16 = vand.u32 4294901760, %v2544_v56  ;;  %v2596_v17 = vsub.f32 %v221_v26, %v385_v29  ;;  %v2598_v20 = vsub.f32 %v223_v27, %v389_v30  ;;  %v2600_v22 = vsub.f32 %v220_v31, %v387_v48  ;;  %p2284_p13 = pnand %p2283_p12, %p2427_p4  ;;  %s2288_s11 = scalar_lea.vmem %s2287_s10, 8192 }
  0x26   : > { %1940 = vmatpush1.bf16.msra.mxu1 %v2548_v57  ;;  %1988 = vmatpush1.bf16.msra.mxu0 %v2548_v57  ;;  %v2602_v23 = vsub.f32 %v222_v32, %v391_v49  ;;  %v637_v24 = vsub.f32 %v2519_v41, %v636_v11  ;;  %v649_v25 = vsub.f32 %v2533_v47, %v648_v14  ;;  %v482_v29 = vand.u32 4294901760, %v2560_v62  ;;  %p2289_p1 = scmp.lt.s32.totalorder %s3106_s4, %s2287_s10  ;;  %p2290_p2 = scmp.lt.s32.totalorder %s2288_s11, %s2282_s8 }
  0x27   : > { %1942 = vmatprep.subr.bf16.mxu1 %v2557_v61  ;;  %1990 = vmatprep.subr.bf16.mxu0 %v2557_v61  ;;  %v643_v28 = vsub.f32 %v2542_v55, %v642_v15  ;;  %v655_v58 = vsub.f32 %v2544_v56, %v654_v16  ;;  %v2608_v3 = vsub.f32 %v225_v33, %v393_v50  ;;  %v462_v50 = vand.u32 4294901760, %v461_v1  ;;  %p2285_p0 = pneg %p2284_p13 }
  0x28   : > { %v2616_v26 = vpack.c.bf16 %v3165_v10, %v403_v9  ;;  %v1997_v27 = vpack.c.bf16 %v648_v14, %v636_v11  ;;  %v638_v30 = vand.u32 4294901760, %v637_v24  ;;  %v650_v31 = vand.u32 4294901760, %v649_v25  ;;  %v207_v11 = vld [vmem:[%s3159_s1 + $0x38] sm:$0xff]  ;;  %p2291_p3 = por %p2290_p2, %p2289_p1 }
  0x29   : > { %v644_v32 = vand.u32 4294901760, %v643_v28  ;;  %v656_v33 = vand.u32 4294901760, %v655_v58  ;;  %v2622_v48 = vsub.f32 %v2503_v35, %v397_v51  ;;  %v2625_v49 = vsub.f32 %v2506_v36, %v395_v52 }
  0x2a   : > { %1944 = vmatpush1.bf16.msra.mxu1 %v2580_v7  ;;  %1992 = vmatpush1.bf16.msra.mxu0 %v2580_v7  ;;  %v660_v10 = vand.u32 4294901760, %v2596_v17  ;;  %v1949_v14 = vpack.c.bf16 %v650_v31, %v638_v30  ;;  %v472_v24 = vsub.f32 %v2512_v38, %v3166_v2  ;;  %v672_v58 = vand.u32 4294901760, %v2598_v20  ;;  %p2292_p5 = pnand %p2291_p3, %p2285_p0 }
  0x2b   : > { %1946 = vmatprep.subr.bf16.mxu1 %v2586_v8  ;;  %1994 = vmatprep.subr.bf16.mxu0 %v2586_v8  ;;  %v666_v35 = vand.u32 4294901760, %v2600_v22  ;;  %v2637_v51 = vsub.f32 %v2509_v37, %v399_v53  ;;  %v1951_v36 = vpack.c.bf16 %v656_v33, %v644_v32  ;;  %v678_v1 = vand.u32 4294901760, %v2602_v23 }
  0x2c   : > { %v661_v52 = vsub.f32 %v2596_v17, %v660_v10  ;;  %v1999_v25 = vpack.c.bf16 %v654_v16, %v642_v15  ;;  %v673_v28 = vsub.f32 %v2598_v20, %v672_v58  ;;  %v2646_v31 = vsel %vm328_vm0, %v207_v11, 0 }
  0x2d   : > { %v667_v30 = vsub.f32 %v2600_v22, %v666_v35  ;;  %v493_v37 = vand.u32 4294901760, %v2563_v63  ;;  %v679_v2 = vsub.f32 %v2602_v23, %v678_v1  ;;  %v2001_v32 = vpack.c.bf16 %v672_v58, %v660_v10 }
  0x2e   : > { %1948 = vmatpush1.bf16.msra.mxu1 %v2616_v26  ;;  %1996 = vmatpush1.bf16.msra.mxu0 %v2616_v26  ;;  %v662_v53 = vand.u32 4294901760, %v661_v52  ;;  %v473_v33 = vand.u32 4294901760, %v472_v24  ;;  %v483_v15 = vsub.f32 %v2560_v62, %v482_v29  ;;  %v674_v16 = vand.u32 4294901760, %v673_v28 }
  0x2f   : > { %1950 = vmatprep.subr.bf16.mxu1 %v1949_v14  ;;  %1998 = vmatprep.subr.bf16.mxu0 %v1997_v27  ;;  %v668_v27 = vand.u32 4294901760, %v667_v30  ;;  %v2658_v11 = vsub.f32 %v2526_v44, %v401_v54  ;;  %v3180_v14 = vmov 0.0   ;;  %v3167_v10 = vand.u32 4294901760, %v2573_v4  ;;  %v208_v30 = vld [vmem:[%s3159_s1 + $0x40] sm:$0xff] }
  0x30   : > { %v3181_v24 = vand.u32 4294901760, %v2529_v45  ;;  %v1953_v44 = vpack.c.bf16 %v674_v16, %v662_v53  ;;  %v2003_v54 = vpack.c.bf16 %v678_v1, %v666_v35  ;;  %v484_v35 = vand.u32 4294901760, %v483_v15 }
  0x31   : > { %463 = vmatmul.mubr.f32.vlgmr.msra.gmra.mrb[0].mxu1 %v462_v50  ;;  %1200 = vmatmul.mubr.f32.vlgmr.msra.gmra.mrb[0].mxu0 %v460_v46  ;;  %v680_v50 = vand.u32 4294901760, %v679_v2  ;;  %v2664_v46 = vsub.f32 %v2492_v21, %v2566_v0  ;;  %v2676_v2 = vsub.f32 %v2552_v59, %v403_v9  ;;  %v494_v21 = vsub.f32 %v2563_v63, %v493_v37 }
  0x32   : > { %1952 = vmatpush1.bf16.msra.mxu1 %v1951_v36  ;;  %468 = vmatprep.mubr.f32.mxu1 %v3180_v14  ;;  %v2669_v58 = vsub.f32 %v2529_v45, %v3181_v24  ;;  %v684_v36 = vand.u32 4294901760, %v2608_v3  ;;  %v696_v45 = vand.u32 4294901760, %v2622_v48  ;;  %v690_v28 = vand.u32 4294901760, %v2625_v49 }
  0x33   : > { %1205 = vmatprep.mubr.f32.mxu0 %v3180_v14  ;;  %2000 = vmatpush1.bf16.msra.mxu0 %v1999_v25  ;;  %v1955_v52 = vpack.c.bf16 %v680_v50, %v668_v27  ;;  %v3182_v25 = vand.u32 4294901760, %v2512_v38  ;;  %v702_v59 = vand.u32 4294901760, %v2637_v51  ;;  %v505_v9 = vsub.f32 %v2573_v4, %v3167_v10 }
  0x34   : > { %2002 = vmatprep.subr.bf16.mxu0 %v2001_v32  ;;  %v685_v1 = vsub.f32 %v2608_v3, %v684_v36  ;;  %v697_v53 = vsub.f32 %v2622_v48, %v696_v45  ;;  %v2005_v32 = vpack.c.bf16 %v696_v45, %v684_v36  ;;  %1954 = vmatprep.subr.bf16.mxu1 %v1953_v44  ;;  %v495_v50 = vand.u32 4294901760, %v494_v21 }
  0x35   : > { %474 = vmatmul.mubr.f32.gmra.mrb[2].mxu1 %v473_v33  ;;  %1209 = vmatmul.mubr.f32.gmra.mrb[2].mxu0 %v3182_v25  ;;  %v3168_v33 = vand.u32 4294901760, %v2664_v46  ;;  %v691_v16 = vsub.f32 %v2625_v49, %v690_v28  ;;  %v703_v27 = vsub.f32 %v2637_v51, %v702_v59  ;;  %v2700_v24 = vand.u32 4294901760, %v2646_v31 }
  0x36   : > { %479 = vmatprep.mubr.f32.mxu1 %v3180_v14  ;;  %1214 = vmatprep.mubr.f32.mxu0 %v3180_v14  ;;  %v686_v15 = vand.u32 4294901760, %v685_v1  ;;  %v698_v25 = vand.u32 4294901760, %v697_v53  ;;  %v2007_v10 = vpack.c.bf16 %v702_v59, %v690_v28  ;;  %v2706_v44 = vsub.f32 %v2517_v40, %v2576_v5  ;;  %v209_v1 = vld [vmem:[%s3159_s1 + $0x48] sm:$0xff] }
  0x37   : > { %2004 = vmatpush1.bf16.msra.mxu0 %v2003_v54  ;;  %1956 = vmatpush1.bf16.msra.mxu1 %v1955_v52  ;;  %v354_v54 = vsel %vm328_vm0, %v208_v30, 0  ;;  %v692_v36 = vand.u32 4294901760, %v691_v16  ;;  %v704_v45 = vand.u32 4294901760, %v703_v27  ;;  %v3184_v21 = vand.u32 4294901760, %v2555_v60 }
  0x38   : > { %2006 = vmatprep.subr.bf16.mxu0 %v2005_v32  ;;  %3183 = vst [vmem:[#allocation9_spill] sm:$0xff] %v2706_v44  ;;  %v2724_v28 = vsub.f32 %v2646_v31, %v2700_v24  ;;  %v708_v59 = vand.u32 4294901760, %v2658_v11  ;;  %v506_v30 = vand.u32 4294901760, %v505_v9  ;;  %v720_v53 = vand.u32 4294901760, %v2669_v58 }
  0x39   : > { %485 = vmatmul.mubr.f32.gmra.mrb[4].mxu1 %v484_v35  ;;  %1218 = vmatmul.mubr.f32.gmra.mrb[4].mxu0 %v482_v29  ;;  %v2712_v52 = vsub.f32 %v2555_v60, %v3184_v21  ;;  %v1957_v35 = vpack.c.bf16 %v698_v25, %v686_v15  ;;  %v516_v29 = vsub.f32 %v2664_v46, %v3168_v33  ;;  %v2726_v60 = vand.u32 4294901760, %v354_v54 }
  0x3a   : > { %490 = vmatprep.mubr.f32.mxu1 %v3180_v14  ;;  %1223 = vmatprep.mubr.f32.mxu0 %v3180_v14  ;;  %v1959_v40 = vpack.c.bf16 %v704_v45, %v692_v36  ;;  %v714_v32 = vand.u32 4294901760, %v2676_v2  ;;  %v357_v31 = vsel %vm328_vm0, %v209_v1, 0  ;;  %v709_v15 = vsub.f32 %v2658_v11, %v708_v59 }
  0x3b   : > { %2008 = vmatpush1.bf16.msra.mxu0 %v2007_v10  ;;  %1958 = vmatprep.subr.bf16.mxu1 %v1957_v35  ;;  %v526_v10 = vand.u32 4294901760, %v2706_v44  ;;  %v726_v16 = vand.u32 4294901760, %v2712_v52  ;;  %v517_v27 = vand.u32 4294901760, %v516_v29  ;;  %v721_v9 = vsub.f32 %v2669_v58, %v720_v53 }
  0x3c   : > { %1960 = vmatpush1.bf16.msra.mxu1 %v1959_v40  ;;  %v537_v25 = vand.u32 4294901760, %v2724_v28  ;;  %v2746_v36 = vsub.f32 %v354_v54, %v2726_v60  ;;  %v710_v45 = vand.u32 4294901760, %v709_v15  ;;  %v3185_v35 = vand.u32 4294901760, %v2573_v4 }
  0x3d   : > { %496 = vmatmul.mubr.f32.gmra.mrb[6].mxu1 %v495_v50  ;;  %1227 = vmatmul.mubr.f32.gmra.mrb[6].mxu0 %v493_v37  ;;  %v210_v37 = vld [vmem:[%s3159_s1 + $0x50] sm:$0xff]  ;;  %v715_v50 = vsub.f32 %v2676_v2, %v714_v32  ;;  %v727_v21 = vsub.f32 %v2712_v52, %v726_v16  ;;  %v527_v29 = vsub.f32 %v2706_v44, %v526_v10  ;;  %v2752_v40 = vand.u32 4294901760, %v357_v31 }
  0x3e   : > { %501 = vmatprep.mubr.f32.mxu1 %v3180_v14  ;;  %1232 = vmatprep.mubr.f32.mxu0 %v3180_v14  ;;  %v722_v1 = vand.u32 4294901760, %v721_v9  ;;  %v360_v54 = vsel %vm328_vm0, %v210_v37, 0  ;;  %v2009_v15 = vpack.c.bf16 %v720_v53, %v708_v59  ;;  %v538_v44 = vsub.f32 %v2724_v28, %v537_v25 }
  0x3f   : > { %v716_v33 = vand.u32 4294901760, %v715_v50  ;;  %v728_v63 = vand.u32 4294901760, %v727_v21  ;;  %v548_v62 = vand.u32 4294901760, %v2746_v36  ;;  %v3186_v50 = vand.u32 4294901760, %v2664_v46 }
  0x40   : > { %v1961_v4 = vpack.c.bf16 %v722_v1, %v710_v45  ;;  %2010 = vmatprep.subr.bf16.mxu0 %v2009_v15  ;;  %v528_v38 = vand.u32 4294901760, %v527_v29  ;;  %v2765_v37 = vsub.f32 %v357_v31, %v2752_v40  ;;  %v2767_v59 = vand.u32 4294901760, %v360_v54 }
  0x41   : > { %507 = vmatmul.mubr.f32.gmra.mrb[8].mxu1 %v506_v30  ;;  %1236 = vmatmul.mubr.f32.gmra.mrb[8].mxu0 %v3185_v35  ;;  %v211_v30 = vld [vmem:[%s3159_s1 + $0x58] sm:$0xff]  ;;  %v2011_v35 = vpack.c.bf16 %v726_v16, %v714_v32  ;;  %v1963_v9 = vpack.c.bf16 %v728_v63, %v716_v33  ;;  %v212_v63 = vld [vmem:[%s3159_s1 + $0x60] sm:$0xff]  ;;  %v1967_v33 = vpack.c.bf16 %v2544_v56, %v2542_v55  ;;  %v233_v55 = vld [vmem:[%s3160_s2 + $0x8] sm:$0xff] }
  0x42   : > { %512 = vmatprep.mubr.f32.mxu1 %v3180_v14  ;;  %1241 = vmatprep.mubr.f32.mxu0 %v3180_v14  ;;  %v363_v53 = vsel %vm328_vm0, %v211_v30, 0  ;;  %v1969_v32 = vpack.c.bf16 %v2598_v20, %v2596_v17  ;;  %v1965_v31 = vpack.c.bf16 %v2533_v47, %v2519_v41  ;;  %v1971_v16 = vpack.c.bf16 %v2602_v23, %v2600_v22  ;;  %v235_v56 = vld [vmem:[%s3160_s2 + $0x18] sm:$0xff]  ;;  %v241_v17 = vld [vmem:[%s3160_s2 + $0x48] sm:$0xff]  ;;  %v240_v20 = vld [vmem:[%s3160_s2 + $0x40] sm:$0xff] }
  0x43   : > { %1962 = vmatprep.subr.bf16.mxu1 %v1961_v4  ;;  %2012 = vmatpush1.bf16.msra.mxu0 %v2011_v35  ;;  %v549_v45 = vsub.f32 %v2746_v36, %v548_v62  ;;  %v1973_v21 = vpack.c.bf16 %v2622_v48, %v2608_v3  ;;  %v559_v4 = vand.u32 4294901760, %v2765_v37  ;;  %v2791_v41 = vsub.f32 %v360_v54, %v2767_v59  ;;  %v214_v35 = vld [vmem:[%s3159_s1 + $0x70] sm:$0xff]  ;;  %v243_v22 = vld [vmem:[%s3160_s2 + $0x58] sm:$0xff]  ;;  %v244_v48 = vld [vmem:[%s3160_s2 + $0x60] sm:$0xff] }
  0x44   : > { %1964 = vmatpush1.bf16.msra.mxu1 %v1963_v9  ;;  %2014 = vmatprep.subr.bf16.mxu0 %v2500_v34  ;;  %v2793_v47 = vand.u32 4294901760, %v363_v53  ;;  %v213_v34 = vld [vmem:[%s3159_s1 + $0x68] sm:$0xff]  ;;  %v1979_v3 = vpack.c.bf16 %v2712_v52, %v2676_v2  ;;  %v242_v23 = vld [vmem:[%s3160_s2 + $0x50] sm:$0xff] }
  0x45   : > { %518 = vmatmul.mubr.f32.gmra.mrb[10].mxu1 %v517_v27  ;;  %1245 = vmatmul.mubr.f32.gmra.mrb[10].mxu0 %v3186_v50  ;;  %v539_v27 = vand.u32 4294901760, %v538_v44  ;;  %v366_v44 = vsel %vm328_vm0, %v212_v63, 0  ;;  %v560_v1 = vsub.f32 %v2765_v37, %v559_v4  ;;  %v570_v54 = vand.u32 4294901760, %v2791_v41 }
  0x46   : > { %523 = vmatprep.mubr.f32.mxu1 %v3180_v14  ;;  %1250 = vmatprep.mubr.f32.mxu0 %v3180_v14  ;;  %v2806_v15 = vsub.f32 %v363_v53, %v2793_v47  ;;  %v369_v30 = vsel %vm328_vm0, %v213_v34, 0 }
  0x47   : > { %1966 = vmatprep.subr.bf16.mxu1 %v1965_v31  ;;  %v561_v9 = vand.u32 4294901760, %v560_v1  ;;  %v571_v50 = vsub.f32 %v2791_v41, %v570_v54  ;;  %v2819_v63 = vand.u32 4294901760, %v369_v30  ;;  %v372_v31 = vsel %vm328_vm0, %v214_v35, 0 }
  0x48   : > { %v581_v53 = vand.u32 4294901760, %v2806_v15 }
  0x49   : > { %529 = vmatmul.mubr.f32.gmra.mrb[12].mxu1 %v528_v38  ;;  %1254 = vmatmul.mubr.f32.gmra.mrb[12].mxu0 %v526_v10  ;;  %v2801_v38 = vand.u32 4294901760, %v366_v44  ;;  %v550_v10 = vand.u32 4294901760, %v549_v45  ;;  %v2830_v34 = vsub.f32 %v369_v30, %v2819_v63 }
  0x4a   : > { %534 = vmatprep.mubr.f32.mxu1 %v3180_v14  ;;  %1259 = vmatprep.mubr.f32.mxu0 %v3180_v14 }
  0x4d   : > { %540 = vmatmul.mubr.f32.gmra.mrb[14].mxu1 %v539_v27  ;;  %1263 = vmatmul.mubr.f32.gmra.mrb[14].mxu0 %v537_v25  ;;  %v2815_v25 = vsub.f32 %v366_v44, %v2801_v38  ;;  %v215_v27 = vld [vmem:[%s3159_s1 + $0x78] sm:$0xff]  ;;  %v582_v44 = vsub.f32 %v2806_v15, %v581_v53 }
  0x4e   : > { %545 = vmatprep.mubr.f32.mxu1 %v3180_v14  ;;  %1268 = vmatprep.mubr.f32.mxu0 %v3180_v14  ;;  %v375_v1 = vsel %vm328_vm0, %v215_v27, 0 }
  0x4f   : > { %v592_v45 = vand.u32 4294901760, %v2815_v25  ;;  %v2842_v30 = vand.u32 4294901760, %v375_v1 }
  0x51   : > { %551 = vmatmul.mubr.f32.gmra.mrb[16].mxu1 %v550_v10  ;;  %1272 = vmatmul.mubr.f32.gmra.mrb[16].mxu0 %v548_v62  ;;  %v572_v62 = vand.u32 4294901760, %v571_v50  ;;  %v2832_v10 = vand.u32 4294901760, %v372_v31  ;;  %v593_v35 = vsub.f32 %v2815_v25, %v592_v45 }
  0x52   : > { %556 = vmatprep.mubr.f32.mxu1 %v3180_v14  ;;  %1277 = vmatprep.mubr.f32.mxu0 %v3180_v14 }
  0x53   : > { %v2840_v50 = vsub.f32 %v372_v31, %v2832_v10  ;;  %v594_v29 = vand.u32 4294901760, %v593_v35  ;;  %v234_v35 = vld [vmem:[%s3160_s2 + $0x10] sm:$0xff] }
  0x55   : > { %562 = vmatmul.mubr.f32.gmra.mrb[18].mxu1 %v561_v9  ;;  %1281 = vmatmul.mubr.f32.gmra.mrb[18].mxu0 %v559_v4  ;;  %v583_v9 = vand.u32 4294901760, %v582_v44  ;;  %v603_v4 = vand.u32 4294901760, %v2830_v34 }
  0x56   : > { %567 = vmatprep.mubr.f32.mxu1 %v3180_v14  ;;  %1286 = vmatprep.mubr.f32.mxu0 %v3180_v14 }
  0x57   : > { %v604_v27 = vsub.f32 %v2830_v34, %v603_v4 }
  0x59   : > { %573 = vmatmul.mubr.f32.gmra.mrb[20].mxu1 %v572_v62  ;;  %1290 = vmatmul.mubr.f32.gmra.mrb[20].mxu0 %v570_v54  ;;  %v614_v62 = vand.u32 4294901760, %v2840_v50  ;;  %v2849_v54 = vsub.f32 %v375_v1, %v2842_v30  ;;  %v605_v31 = vand.u32 4294901760, %v604_v27 }
  0x5a   : > { %578 = vmatprep.mubr.f32.mxu1 %v3180_v14  ;;  %1295 = vmatprep.mubr.f32.mxu0 %v3180_v14 }
  0x5b   : > { %v615_v44 = vsub.f32 %v2840_v50, %v614_v62 }
  0x5d   : > { %584 = vmatmul.mubr.f32.gmra.mrb[22].mxu1 %v583_v9  ;;  %1299 = vmatmul.mubr.f32.gmra.mrb[22].mxu0 %v581_v53  ;;  %v625_v9 = vand.u32 4294901760, %v2849_v54  ;;  %v616_v53 = vand.u32 4294901760, %v615_v44 }
  0x5e   : > { %589 = vmatprep.mubr.f32.mxu1 %v3180_v14  ;;  %1304 = vmatprep.mubr.f32.mxu0 %v3180_v14 }
  0x5f   : > { %v626_v1 = vsub.f32 %v2849_v54, %v625_v9 }
  0x61   : > { %595 = vmatmul.mubr.f32.gmra.mrb[24].mxu1 %v594_v29  ;;  %1308 = vmatmul.mubr.f32.gmra.mrb[24].mxu0 %v592_v45  ;;  %v627_v29 = vand.u32 4294901760, %v626_v1  ;;  %v232_v45 = vld [vmem:[%s3160_s2] sm:$0xff] }
  0x62   : > { %600 = vmatprep.mubr.f32.mxu1 %v3180_v14  ;;  %1313 = vmatprep.mubr.f32.mxu0 %v3180_v14 }
  0x65   : > { %606 = vmatmul.mubr.f32.gmra.mrb[26].mxu1 %v605_v31  ;;  %1317 = vmatmul.mubr.f32.gmra.mrb[26].mxu0 %v603_v4  ;;  %v2363_v4 = vmov 0  }
  0x66   : > { %611 = vmatprep.mubr.f32.mxu1 %v3180_v14  ;;  %1322 = vmatprep.mubr.f32.mxu0 %v3180_v14 }
  0x67   : > { %2280 = vset.pattern.permute.xlu0 %v2363_v4  ;;  %2281 = vset.pattern.permute.xlu1 %v2363_v4 }
  0x68   : > { %250 = vperm.xlu0 %2280, %v232_v45   ;;  %260 = vperm.xlu1 %2281, %v234_v35  }
  0x69   : > { %617 = vmatmul.mubr.f32.gmra.mrb[28].mxu1 %v616_v53  ;;  %1326 = vmatmul.mubr.f32.gmra.mrb[28].mxu0 %v614_v62 }
  0x6a   : > { %622 = vmatprep.mubr.f32.mxu1 %v3180_v14  ;;  %1331 = vmatprep.mubr.f32.mxu0 %v3180_v14 }
  0x6c   : > { %255 = vperm.xlu0 %2280, %v233_v55   ;;  %265 = vperm.xlu1 %2281, %v235_v56  }
  0x6d   : > { %628 = vmatmul.mubr.f32.gmra.mrb[30].mxu1 %v627_v29  ;;  %1335 = vmatmul.mubr.f32.gmra.mrb[30].mxu0 %v625_v9 }
  0x6e   : > { %778 = vmatprep.mubr.f32.mxu1 %v3180_v14  ;;  %1453 = vmatprep.mubr.f32.mxu0 %v3180_v14 }
  0x71   : > { %780 = vmatmul.mubr.f32.vlgmr.msra.gmra.mrb[0].mxu1 %v2459_v6  ;;  %1455 = vmatmul.mubr.f32.vlgmr.msra.gmra.mrb[0].mxu0 %v2459_v6 }
  0x72   : > { %1968 = vmatpush1.bf16.msra.mxu1 %v1967_v33  ;;  %785 = vmatprep.mubr.f32.mxu1 %v3180_v14 }
  0x73   : > { %1460 = vmatprep.mubr.f32.mxu0 %v3180_v14  ;;  %2016 = vmatpush1.bf16.msra.mxu0 %v2521_v42  ;;  %v1977_v42 = vpack.c.bf16 %v2669_v58, %v2658_v11  ;;  %v3188_v11 = vld [vmem:[#allocation5_spill] sm:$0xff]  ;;  %v3189_v58 = vld [vmem:[#allocation6_spill] sm:$0xff] }
  0x74   : > { %1970 = vmatprep.subr.bf16.mxu1 %v1969_v32  ;;  %2018 = vmatprep.subr.bf16.mxu0 %v2523_v43  ;;  %v3187_v43 = vpack.c.bf16 %v2637_v51, %v2625_v49  ;;  %v247_v49 = vld [vmem:[%s3160_s2 + $0x78] sm:$0xff]  ;;  %v246_v51 = vld [vmem:[%s3160_s2 + $0x70] sm:$0xff] }
  0x75   : > { %787 = vmatmul.mubr.f32.gmra.mrb[2].mxu1 %v2475_v12  ;;  %1462 = vmatmul.mubr.f32.gmra.mrb[2].mxu0 %v2475_v12 }
  0x76   : > { %792 = vmatprep.mubr.f32.mxu1 %v3180_v14  ;;  %1467 = vmatprep.mubr.f32.mxu0 %v3180_v14 }
  0x77   : > { %1972 = vmatpush1.bf16.msra.mxu1 %v1971_v16  ;;  %2020 = vmatpush1.bf16.msra.mxu0 %v2548_v57  ;;  %v237_v57 = vld [vmem:[%s3160_s2 + $0x28] sm:$0xff] }
  0x78   : > { %1974 = vmatprep.subr.bf16.mxu1 %v1973_v21  ;;  %2022 = vmatprep.subr.bf16.mxu0 %v2557_v61  ;;  %v236_v61 = vld [vmem:[%s3160_s2 + $0x20] sm:$0xff] }
  0x79   : > { %794 = vmatmul.mubr.f32.gmra.mrb[4].mxu1 %v2477_v13  ;;  %1469 = vmatmul.mubr.f32.gmra.mrb[4].mxu0 %v2477_v13 }
  0x7a   : > { %799 = vmatprep.mubr.f32.mxu1 %v3180_v14  ;;  %1474 = vmatprep.mubr.f32.mxu0 %v3180_v14 }
  0x7b   : > { %1976 = vmatpush1.bf16.msra.mxu1 %v3187_v43  ;;  %2024 = vmatpush1.bf16.msra.mxu0 %v2580_v7  ;;  %v239_v7 = vld [vmem:[%s3160_s2 + $0x38] sm:$0xff] }
  0x7c   : > { %1978 = vmatprep.subr.bf16.mxu1 %v1977_v42  ;;  %2026 = vmatprep.subr.bf16.mxu0 %v2586_v8  ;;  %v238_v8 = vld [vmem:[%s3160_s2 + $0x30] sm:$0xff] }
  0x7d   : > { %801 = vmatmul.mubr.f32.gmra.mrb[6].mxu1 %v2488_v19  ;;  %1476 = vmatmul.mubr.f32.gmra.mrb[6].mxu0 %v2488_v19 }
  0x7e   : > { %806 = vmatprep.mubr.f32.mxu1 %v3180_v14  ;;  %1481 = vmatprep.mubr.f32.mxu0 %v3180_v14 }
  0x7f   : > { %1980 = vmatpush1.bf16.msra.mxu1 %v1979_v3  ;;  %2028 = vmatpush1.bf16.msra.mxu0 %v2616_v26  ;;  %v245_v26 = vld [vmem:[%s3160_s2 + $0x68] sm:$0xff] }
  0x80   : > { %275 = vperm.xlu1 %2281, %v237_v57   ;;  %270 = vperm.xlu0 %2280, %v236_v61  }
  0x81   : > { %808 = vmatmul.mubr.f32.gmra.mrb[8].mxu1 %v2514_v39  ;;  %1483 = vmatmul.mubr.f32.gmra.mrb[8].mxu0 %v2514_v39 }
  0x82   : > { %813 = vmatprep.mubr.f32.mxu1 %v3180_v14  ;;  %1488 = vmatprep.mubr.f32.mxu0 %v3180_v14 }
  0x84   : > { %285 = vperm.xlu1 %2281, %v239_v7   ;;  %280 = vperm.xlu0 %2280, %v238_v8  }
  0x85   : > { %815 = vmatmul.mubr.f32.gmra.mrb[10].mxu1 %v2566_v0  ;;  %1490 = vmatmul.mubr.f32.gmra.mrb[10].mxu0 %v2566_v0 }
  0x86   : > { %820 = vmatprep.mubr.f32.mxu1 %v3180_v14  ;;  %1495 = vmatprep.mubr.f32.mxu0 %v3180_v14 }
  0x88   : > { %295 = vperm.xlu1 %2281, %v241_v17   ;;  %290 = vperm.xlu0 %2280, %v240_v20  }
  0x89   : > { %822 = vmatmul.mubr.f32.gmra.mrb[12].mxu1 %v2576_v5  ;;  %1497 = vmatmul.mubr.f32.gmra.mrb[12].mxu0 %v2576_v5 }
  0x8a   : > { %827 = vmatprep.mubr.f32.mxu1 %v3180_v14  ;;  %1502 = vmatprep.mubr.f32.mxu0 %v3180_v14 }
  0x8c   : > { %305 = vperm.xlu1 %2281, %v243_v22   ;;  %300 = vperm.xlu0 %2280, %v242_v23  }
  0x8d   : > { %829 = vmatmul.mubr.f32.gmra.mrb[14].mxu1 %v2700_v24  ;;  %1504 = vmatmul.mubr.f32.gmra.mrb[14].mxu0 %v2700_v24 }
  0x8e   : > { %834 = vmatprep.mubr.f32.mxu1 %v3180_v14  ;;  %1509 = vmatprep.mubr.f32.mxu0 %v3180_v14 }
  0x90   : > { %315 = vperm.xlu1 %2281, %v245_v26   ;;  %310 = vperm.xlu0 %2280, %v244_v48  }
  0x91   : > { %836 = vmatmul.mubr.f32.gmra.mrb[16].mxu1 %v2726_v60  ;;  %1511 = vmatmul.mubr.f32.gmra.mrb[16].mxu0 %v2726_v60 }
  0x92   : > { %841 = vmatprep.mubr.f32.mxu1 %v3180_v14  ;;  %1516 = vmatprep.mubr.f32.mxu0 %v3180_v14 }
  0x94   : > { %325 = vperm.xlu1 %2281, %v247_v49   ;;  %320 = vperm.xlu0 %2280, %v246_v51  }
  0x95   : > { %843 = vmatmul.mubr.f32.gmra.mrb[18].mxu1 %v2752_v40  ;;  %1518 = vmatmul.mubr.f32.gmra.mrb[18].mxu0 %v2752_v40 }
  0x96   : > { %848 = vmatprep.mubr.f32.mxu1 %v3180_v14  ;;  %1523 = vmatprep.mubr.f32.mxu0 %v3180_v14 }
  0x99   : > { %850 = vmatmul.mubr.f32.gmra.mrb[20].mxu1 %v2767_v59  ;;  %1525 = vmatmul.mubr.f32.gmra.mrb[20].mxu0 %v2767_v59 }
  0x9a   : > { %855 = vmatprep.mubr.f32.mxu1 %v3180_v14  ;;  %1530 = vmatprep.mubr.f32.mxu0 %v3180_v14 }
  0x9d   : > { %857 = vmatmul.mubr.f32.gmra.mrb[22].mxu1 %v2793_v47  ;;  %1532 = vmatmul.mubr.f32.gmra.mrb[22].mxu0 %v2793_v47 }
  0x9e   : > { %862 = vmatprep.mubr.f32.mxu1 %v3180_v14  ;;  %1537 = vmatprep.mubr.f32.mxu0 %v3180_v14 }
  0xa1   : > { %864 = vmatmul.mubr.f32.gmra.mrb[24].mxu1 %v2801_v38  ;;  %1539 = vmatmul.mubr.f32.gmra.mrb[24].mxu0 %v2801_v38 }
  0xa2   : > { %869 = vmatprep.mubr.f32.mxu1 %v3180_v14  ;;  %1544 = vmatprep.mubr.f32.mxu0 %v3180_v14 }
  0xa5   : > { %871 = vmatmul.mubr.f32.gmra.mrb[26].mxu1 %v2819_v63  ;;  %1546 = vmatmul.mubr.f32.gmra.mrb[26].mxu0 %v2819_v63 }
  0xa6   : > { %876 = vmatprep.mubr.f32.mxu1 %v3180_v14  ;;  %1551 = vmatprep.mubr.f32.mxu0 %v3180_v14 }
  0xa9   : > { %878 = vmatmul.mubr.f32.gmra.mrb[28].mxu1 %v2832_v10  ;;  %1553 = vmatmul.mubr.f32.gmra.mrb[28].mxu0 %v2832_v10 }
  0xaa   : > { %883 = vmatprep.mubr.f32.mxu1 %v3180_v14  ;;  %1558 = vmatprep.mubr.f32.mxu0 %v3180_v14 }
  0xad   : > { %885 = vmatmul.mubr.f32.gmra.mrb[30].mxu1 %v2842_v30  ;;  %1560 = vmatmul.mubr.f32.gmra.mrb[30].mxu0 %v2842_v30 }
  0xae   : > { %987 = vmatprep.mubr.f32.mxu1 %v3180_v14  ;;  %1646 = vmatprep.mubr.f32.mxu0 %v3180_v14 }
  0xb1   : > { %990 = vmatmul.mubr.f32.vlgmr.msra.gmra.mrb[0].mxu1 %v2486_v18  ;;  %1648 = vmatmul.mubr.f32.vlgmr.msra.gmra.mrb[0].mxu0 %v2459_v6  ;;  %v3190_v6 = vld [vmem:[#allocation7_spill] sm:$0xff] }
  0xb2   : > { %995 = vmatprep.mubr.f32.mxu1 %v3180_v14  ;;  %1653 = vmatprep.mubr.f32.mxu0 %v3180_v14 }
  0xb5   : > { %998 = vmatmul.mubr.f32.gmra.mrb[2].mxu1 %v3188_v11  ;;  %1655 = vmatmul.mubr.f32.gmra.mrb[2].mxu0 %v2475_v12  ;;  %v3191_v12 = vld [vmem:[#allocation8_spill] sm:$0xff] }
  0xb6   : > { %1003 = vmatprep.mubr.f32.mxu1 %v3180_v14  ;;  %1660 = vmatprep.mubr.f32.mxu0 %v3180_v14 }
  0xb9   : > { %1006 = vmatmul.mubr.f32.gmra.mrb[4].mxu1 %v3189_v58  ;;  %1662 = vmatmul.mubr.f32.gmra.mrb[4].mxu0 %v2477_v13  ;;  %v3192_v13 = vld [vmem:[#allocation9_spill] sm:$0xff] }
  0xba   : > { %1011 = vmatprep.mubr.f32.mxu1 %v3180_v14  ;;  %1667 = vmatprep.mubr.f32.mxu0 %v3180_v14 }
  0xbd   : > { %1014 = vmatmul.mubr.f32.gmra.mrb[6].mxu1 %v3190_v6  ;;  %1669 = vmatmul.mubr.f32.gmra.mrb[6].mxu0 %v2488_v19 }
  0xbe   : > { %1019 = vmatprep.mubr.f32.mxu1 %v3180_v14  ;;  %1674 = vmatprep.mubr.f32.mxu0 %v3180_v14 }
  0xc1   : > { %1022 = vmatmul.mubr.f32.gmra.mrb[8].mxu1 %v3191_v12  ;;  %1676 = vmatmul.mubr.f32.gmra.mrb[8].mxu0 %v2514_v39 }
  0xc2   : > { %1027 = vmatprep.mubr.f32.mxu1 %v3180_v14  ;;  %1681 = vmatprep.mubr.f32.mxu0 %v3180_v14 }
  0xc5   : > { %1030 = vmatmul.mubr.f32.gmra.mrb[10].mxu1 %v2664_v46  ;;  %1683 = vmatmul.mubr.f32.gmra.mrb[10].mxu0 %v2566_v0 }
  0xc6   : > { %1035 = vmatprep.mubr.f32.mxu1 %v3180_v14  ;;  %1688 = vmatprep.mubr.f32.mxu0 %v3180_v14 }
  0xc9   : > { %1038 = vmatmul.mubr.f32.gmra.mrb[12].mxu1 %v3192_v13  ;;  %1690 = vmatmul.mubr.f32.gmra.mrb[12].mxu0 %v2576_v5 }
  0xca   : > { %1043 = vmatprep.mubr.f32.mxu1 %v3180_v14  ;;  %1695 = vmatprep.mubr.f32.mxu0 %v3180_v14 }
  0xcd   : > { %1046 = vmatmul.mubr.f32.gmra.mrb[14].mxu1 %v2724_v28  ;;  %1697 = vmatmul.mubr.f32.gmra.mrb[14].mxu0 %v2700_v24 }
  0xce   : > { %1051 = vmatprep.mubr.f32.mxu1 %v3180_v14  ;;  %1702 = vmatprep.mubr.f32.mxu0 %v3180_v14 }
  0xd1   : > { %1054 = vmatmul.mubr.f32.gmra.mrb[16].mxu1 %v2746_v36  ;;  %1704 = vmatmul.mubr.f32.gmra.mrb[16].mxu0 %v2726_v60 }
  0xd2   : > { %1059 = vmatprep.mubr.f32.mxu1 %v3180_v14  ;;  %1709 = vmatprep.mubr.f32.mxu0 %v3180_v14 }
  0xd5   : > { %1062 = vmatmul.mubr.f32.gmra.mrb[18].mxu1 %v2765_v37  ;;  %1711 = vmatmul.mubr.f32.gmra.mrb[18].mxu0 %v2752_v40 }
  0xd6   : > { %1067 = vmatprep.mubr.f32.mxu1 %v3180_v14  ;;  %1716 = vmatprep.mubr.f32.mxu0 %v3180_v14 }
  0xd9   : > { %1070 = vmatmul.mubr.f32.gmra.mrb[20].mxu1 %v2791_v41  ;;  %1718 = vmatmul.mubr.f32.gmra.mrb[20].mxu0 %v2767_v59 }
  0xda   : > { %1075 = vmatprep.mubr.f32.mxu1 %v3180_v14  ;;  %1723 = vmatprep.mubr.f32.mxu0 %v3180_v14 }
  0xdd   : > { %1078 = vmatmul.mubr.f32.gmra.mrb[22].mxu1 %v2806_v15  ;;  %1725 = vmatmul.mubr.f32.gmra.mrb[22].mxu0 %v2793_v47 }
  0xde   : > { %1083 = vmatprep.mubr.f32.mxu1 %v3180_v14  ;;  %1730 = vmatprep.mubr.f32.mxu0 %v3180_v14 }
  0xe1   : > { %1086 = vmatmul.mubr.f32.gmra.mrb[24].mxu1 %v2815_v25  ;;  %1732 = vmatmul.mubr.f32.gmra.mrb[24].mxu0 %v2801_v38 }
  0xe2   : > { %1091 = vmatprep.mubr.f32.mxu1 %v3180_v14  ;;  %1737 = vmatprep.mubr.f32.mxu0 %v3180_v14 }
  0xe5   : > { %1094 = vmatmul.mubr.f32.gmra.mrb[26].mxu1 %v2830_v34  ;;  %1739 = vmatmul.mubr.f32.gmra.mrb[26].mxu0 %v2819_v63 }
  0xe6   : > { %1099 = vmatprep.mubr.f32.mxu1 %v3180_v14  ;;  %1744 = vmatprep.mubr.f32.mxu0 %v3180_v14 }
  0xe7   : > { %v251_v18 = vpop.permute.xlu0 %250  ;;  %v261_v28 = vpop.permute.xlu1 %260 }
  0xe9   : > { %1102 = vmatmul.mubr.f32.gmra.mrb[28].mxu1 %v2840_v50  ;;  %1746 = vmatmul.mubr.f32.gmra.mrb[28].mxu0 %v2832_v10 }
  0xea   : > { %1107 = vmatprep.mubr.f32.mxu1 %v3180_v14  ;;  %1751 = vmatprep.mubr.f32.mxu0 %v3180_v14 }
  0xeb   : > { %v256_v24 = vpop.permute.xlu0 %255  ;;  %v266_v27 = vpop.permute.xlu1 %265 }
  0xed   : > { %1110 = vmatmul.mubr.f32.gmra.mrb[30].mxu1 %v2849_v54  ;;  %1753 = vmatmul.mubr.f32.gmra.mrb[30].mxu0 %v2842_v30 }
  0xff   : > { %v271_v4 = vpop.permute.xlu0 %270  ;;  %v276_v17 = vpop.permute.xlu1 %275 }
 0x103   : > { %v281_v12 = vpop.permute.xlu0 %280 }
 0x184   : > { %v991_v19 = vpop.f32.mrb[0].mxu1  ;;  %v1649_v39 = vpop.f32.mrb[0].mxu0 }
 0x185   : > { %v2029_v0 = vadd.f32 %v991_v19, %v251_v18  ;;  %v993_v5 = vpop.f32.mrb[1].mxu1  ;;  %v1651_v46 = vpop.f32.mrb[1].mxu0 }
 0x186   : > { %v2031_v2 = vadd.f32 %v993_v5, %v251_v18 }
 0x187   : > { %v2030_v52 = vadd.f32 %v2029_v0, %v1649_v39 }
 0x188   : > { %v2032_v60 = vadd.f32 %v2031_v2, %v1651_v46  ;;  %v999_v36 = vpop.f32.mrb[2].mxu1  ;;  %v1656_v14 = vpop.f32.mrb[2].mxu0 }
 0x189   : > { %v1759_v40 = vmax.f32 %v2030_v52, 0.0  ;;  %v2033_v37 = vadd.f32 %v999_v36, %v256_v24  ;;  %v1001_v59 = vpop.f32.mrb[3].mxu1  ;;  %v1658_v33 = vpop.f32.mrb[3].mxu0 }
 0x18a   : > { %v1760_v32 = vmax.f32 %v2032_v60, 0.0  ;;  %v2035_v16 = vadd.f32 %v1001_v59, %v256_v24 }
 0x18b   : > { %1791 = vst [vmem:[%s3067_s29] sm:$0xff] %v1759_v40  ;;  %v2034_v21 = vadd.f32 %v2033_v37, %v1656_v14 }
 0x18c   : > { %1792 = vst [vmem:[%s3067_s29 + $0x8] sm:$0xff] %v1760_v32  ;;  %v2036_v41 = vadd.f32 %v2035_v16, %v1658_v33  ;;  %v1007_v47 = vpop.f32.mrb[4].mxu1  ;;  %v1663_v38 = vpop.f32.mrb[4].mxu0 }
 0x18d   : > { %v1761_v15 = vmax.f32 %v2034_v21, 0.0  ;;  %v2037_v25 = vadd.f32 %v1007_v47, %v261_v28  ;;  %v1009_v63 = vpop.f32.mrb[5].mxu1  ;;  %v1665_v34 = vpop.f32.mrb[5].mxu0 }
 0x18e   : > { %v1762_v10 = vmax.f32 %v2036_v41, 0.0  ;;  %v2039_v50 = vadd.f32 %v1009_v63, %v261_v28  ;;  %v286_v28 = vpop.permute.xlu1 %285  ;;  %v291_v41 = vpop.permute.xlu0 %290 }
 0x18f   : > { %1793 = vst [vmem:[%s3067_s29 + $0x10] sm:$0xff] %v1761_v15  ;;  %v2038_v30 = vadd.f32 %v2037_v25, %v1663_v38 }
 0x190   : > { %1794 = vst [vmem:[%s3067_s29 + $0x18] sm:$0xff] %v1762_v10  ;;  %v2040_v62 = vadd.f32 %v2039_v50, %v1665_v34  ;;  %v1015_v54 = vpop.f32.mrb[6].mxu1  ;;  %v1670_v31 = vpop.f32.mrb[6].mxu0 }
 0x191   : > { %v1763_v44 = vmax.f32 %v2038_v30, 0.0  ;;  %v2041_v9 = vadd.f32 %v1015_v54, %v266_v27  ;;  %v1017_v53 = vpop.f32.mrb[7].mxu1  ;;  %v1672_v1 = vpop.f32.mrb[7].mxu0 }
 0x192   : > { %v1764_v29 = vmax.f32 %v2040_v62, 0.0  ;;  %v2043_v45 = vadd.f32 %v1017_v53, %v266_v27  ;;  %v296_v62 = vpop.permute.xlu1 %295 }
 0x193   : > { %1795 = vst [vmem:[%s3067_s29 + $0x20] sm:$0xff] %v1763_v44  ;;  %v2042_v35 = vadd.f32 %v2041_v9, %v1670_v31 }
 0x194   : > { %1796 = vst [vmem:[%s3067_s29 + $0x28] sm:$0xff] %v1764_v29  ;;  %v2044_v42 = vadd.f32 %v2043_v45, %v1672_v1  ;;  %v1023_v43 = vpop.f32.mrb[8].mxu1  ;;  %v1677_v3 = vpop.f32.mrb[8].mxu0 }
 0x195   : > { %v1765_v55 = vmax.f32 %v2042_v35, 0.0  ;;  %v2045_v56 = vadd.f32 %v1023_v43, %v271_v4  ;;  %v1025_v57 = vpop.f32.mrb[9].mxu1  ;;  %v1679_v61 = vpop.f32.mrb[9].mxu0 }
 0x196   : > { %v1766_v7 = vmax.f32 %v2044_v42, 0.0  ;;  %v2047_v8 = vadd.f32 %v1025_v57, %v271_v4  ;;  %v301_v42 = vpop.permute.xlu0 %300 }
 0x197   : > { %1797 = vst [vmem:[%s3067_s29 + $0x30] sm:$0xff] %v1765_v55  ;;  %v2046_v20 = vadd.f32 %v2045_v56, %v1677_v3 }
 0x198   : > { %1798 = vst [vmem:[%s3067_s29 + $0x38] sm:$0xff] %v1766_v7  ;;  %v2048_v22 = vadd.f32 %v2047_v8, %v1679_v61  ;;  %v1031_v23 = vpop.f32.mrb[10].mxu1  ;;  %v1684_v26 = vpop.f32.mrb[10].mxu0 }
 0x199   : > { %v1767_v48 = vmax.f32 %v2046_v20, 0.0  ;;  %v2049_v49 = vadd.f32 %v1031_v23, %v276_v17  ;;  %v1033_v51 = vpop.f32.mrb[11].mxu1  ;;  %v1686_v11 = vpop.f32.mrb[11].mxu0 }
 0x19a   : > { %v1768_v58 = vmax.f32 %v2048_v22, 0.0  ;;  %v2051_v6 = vadd.f32 %v1033_v51, %v276_v17  ;;  %v306_v22 = vpop.permute.xlu1 %305 }
 0x19b   : > { %1799 = vst [vmem:[%s3067_s29 + $0x40] sm:$0xff] %v1767_v48  ;;  %v2050_v13 = vadd.f32 %v2049_v49, %v1684_v26 }
 0x19c   : > { %1800 = vst [vmem:[%s3067_s29 + $0x48] sm:$0xff] %v1768_v58  ;;  %v2052_v18 = vadd.f32 %v2051_v6, %v1686_v11  ;;  %v1039_v19 = vpop.f32.mrb[12].mxu1  ;;  %v1691_v39 = vpop.f32.mrb[12].mxu0 }
 0x19d   : > { %v1769_v0 = vmax.f32 %v2050_v13, 0.0  ;;  %v2053_v5 = vadd.f32 %v1039_v19, %v281_v12  ;;  %v1041_v46 = vpop.f32.mrb[13].mxu1  ;;  %v1693_v2 = vpop.f32.mrb[13].mxu0 }
 0x19e   : > { %v1770_v24 = vmax.f32 %v2052_v18, 0.0  ;;  %v2055_v52 = vadd.f32 %v1041_v46, %v281_v12  ;;  %v311_v18 = vpop.permute.xlu0 %310 }
 0x19f   : > { %1801 = vst [vmem:[%s3067_s29 + $0x50] sm:$0xff] %v1769_v0  ;;  %v2054_v60 = vadd.f32 %v2053_v5, %v1691_v39 }
 0x1a0   : > { %1802 = vst [vmem:[%s3067_s29 + $0x58] sm:$0xff] %v1770_v24  ;;  %v2056_v36 = vadd.f32 %v2055_v52, %v1693_v2  ;;  %v1047_v14 = vpop.f32.mrb[14].mxu1  ;;  %v1698_v40 = vpop.f32.mrb[14].mxu0 }
 0x1a1   : > { %v1771_v37 = vmax.f32 %v2054_v60, 0.0  ;;  %v2057_v59 = vadd.f32 %v1047_v14, %v286_v28  ;;  %v1049_v33 = vpop.f32.mrb[15].mxu1  ;;  %v1700_v32 = vpop.f32.mrb[15].mxu0 }
 0x1a2   : > { %v1772_v16 = vmax.f32 %v2056_v36, 0.0  ;;  %v2059_v21 = vadd.f32 %v1049_v33, %v286_v28  ;;  %v316_v36 = vpop.permute.xlu1 %315 }
 0x1a3   : > { %1803 = vst [vmem:[%s3067_s29 + $0x60] sm:$0xff] %v1771_v37  ;;  %v2058_v47 = vadd.f32 %v2057_v59, %v1698_v40 }
 0x1a4   : > { %1804 = vst [vmem:[%s3067_s29 + $0x68] sm:$0xff] %v1772_v16  ;;  %v2060_v38 = vadd.f32 %v2059_v21, %v1700_v32  ;;  %v1055_v15 = vpop.f32.mrb[16].mxu1  ;;  %v1705_v25 = vpop.f32.mrb[16].mxu0 }
 0x1a5   : > { %v1773_v63 = vmax.f32 %v2058_v47, 0.0  ;;  %v2061_v34 = vadd.f32 %v1055_v15, %v291_v41  ;;  %v1057_v10 = vpop.f32.mrb[17].mxu1  ;;  %v1707_v50 = vpop.f32.mrb[17].mxu0 }
 0x1a6   : > { %v1774_v30 = vmax.f32 %v2060_v38, 0.0  ;;  %v2063_v27 = vadd.f32 %v1057_v10, %v291_v41  ;;  %v321_v38 = vpop.permute.xlu0 %320 }
 0x1a7   : > { %1805 = vst [vmem:[%s3067_s29 + $0x70] sm:$0xff] %v1773_v63  ;;  %v2062_v54 = vadd.f32 %v2061_v34, %v1705_v25 }
 0x1a8   : > { %1806 = vst [vmem:[%s3067_s29 + $0x78] sm:$0xff] %v1774_v30  ;;  %v2064_v31 = vadd.f32 %v2063_v27, %v1707_v50  ;;  %v1063_v44 = vpop.f32.mrb[18].mxu1  ;;  %v1712_v9 = vpop.f32.mrb[18].mxu0 }
 0x1a9   : > { %v1775_v53 = vmax.f32 %v2062_v54, 0.0  ;;  %v2065_v1 = vadd.f32 %v1063_v44, %v296_v62  ;;  %v1065_v29 = vpop.f32.mrb[19].mxu1  ;;  %v1714_v45 = vpop.f32.mrb[19].mxu0 }
 0x1aa   : > { %v1776_v35 = vmax.f32 %v2064_v31, 0.0  ;;  %v2067_v4 = vadd.f32 %v1065_v29, %v296_v62  ;;  %v326_v31 = vpop.permute.xlu1 %325 }
 0x1ab   : > { %1807 = vst [vmem:[%s3067_s29 + $0x80] sm:$0xff] %v1775_v53  ;;  %v2066_v43 = vadd.f32 %v2065_v1, %v1712_v9 }
 0x1ac   : > { %1808 = vst [vmem:[%s3067_s29 + $0x88] sm:$0xff] %v1776_v35  ;;  %v2068_v3 = vadd.f32 %v2067_v4, %v1714_v45  ;;  %v1071_v55 = vpop.f32.mrb[20].mxu1  ;;  %v1719_v56 = vpop.f32.mrb[20].mxu0 }
 0x1ad   : > { %v1777_v57 = vmax.f32 %v2066_v43, 0.0  ;;  %v2069_v61 = vadd.f32 %v1071_v55, %v301_v42  ;;  %v1073_v7 = vpop.f32.mrb[21].mxu1  ;;  %v1721_v8 = vpop.f32.mrb[21].mxu0 }
 0x1ae   : > { %v1778_v17 = vmax.f32 %v2068_v3, 0.0  ;;  %v2071_v20 = vadd.f32 %v1073_v7, %v301_v42 }
 0x1af   : > { %1809 = vst [vmem:[%s3067_s29 + $0x90] sm:$0xff] %v1777_v57  ;;  %v2070_v23 = vadd.f32 %v2069_v61, %v1719_v56 }
 0x1b0   : > { %1810 = vst [vmem:[%s3067_s29 + $0x98] sm:$0xff] %v1778_v17  ;;  %v2072_v26 = vadd.f32 %v2071_v20, %v1721_v8  ;;  %v1079_v48 = vpop.f32.mrb[22].mxu1  ;;  %v1726_v49 = vpop.f32.mrb[22].mxu0 }
 0x1b1   : > { %v1779_v51 = vmax.f32 %v2070_v23, 0.0  ;;  %v2073_v11 = vadd.f32 %v1079_v48, %v306_v22  ;;  %v1081_v58 = vpop.f32.mrb[23].mxu1  ;;  %v1728_v6 = vpop.f32.mrb[23].mxu0 }
 0x1b2   : > { %v1780_v12 = vmax.f32 %v2072_v26, 0.0  ;;  %v2075_v13 = vadd.f32 %v1081_v58, %v306_v22 }
 0x1b3   : > { %1811 = vst [vmem:[%s3067_s29 + $0xa0] sm:$0xff] %v1779_v51  ;;  %v2074_v19 = vadd.f32 %v2073_v11, %v1726_v49 }
 0x1b4   : > { %1812 = vst [vmem:[%s3067_s29 + $0xa8] sm:$0xff] %v1780_v12  ;;  %v2076_v39 = vadd.f32 %v2075_v13, %v1728_v6  ;;  %v1087_v0 = vpop.f32.mrb[24].mxu1  ;;  %v1733_v5 = vpop.f32.mrb[24].mxu0 }
 0x1b5   : > { %v1781_v46 = vmax.f32 %v2074_v19, 0.0  ;;  %v2077_v2 = vadd.f32 %v1087_v0, %v311_v18  ;;  %v1089_v24 = vpop.f32.mrb[25].mxu1  ;;  %v1735_v52 = vpop.f32.mrb[25].mxu0 }
 0x1b6   : > { %v1782_v28 = vmax.f32 %v2076_v39, 0.0  ;;  %v2079_v60 = vadd.f32 %v1089_v24, %v311_v18 }
 0x1b7   : > { %1813 = vst [vmem:[%s3067_s29 + $0xb0] sm:$0xff] %v1781_v46  ;;  %v2078_v14 = vadd.f32 %v2077_v2, %v1733_v5 }
 0x1b8   : > { %1814 = vst [vmem:[%s3067_s29 + $0xb8] sm:$0xff] %v1782_v28  ;;  %v2080_v40 = vadd.f32 %v2079_v60, %v1735_v52  ;;  %v1095_v37 = vpop.f32.mrb[26].mxu1  ;;  %v1740_v59 = vpop.f32.mrb[26].mxu0 }
 0x1b9   : > { %v1783_v33 = vmax.f32 %v2078_v14, 0.0  ;;  %v2081_v32 = vadd.f32 %v1095_v37, %v316_v36  ;;  %v1097_v16 = vpop.f32.mrb[27].mxu1  ;;  %v1742_v21 = vpop.f32.mrb[27].mxu0 }
 0x1ba   : > { %v1784_v41 = vmax.f32 %v2080_v40, 0.0  ;;  %v2083_v47 = vadd.f32 %v1097_v16, %v316_v36 }
 0x1bb   : > { %1815 = vst [vmem:[%s3067_s29 + $0xc0] sm:$0xff] %v1783_v33  ;;  %v2082_v15 = vadd.f32 %v2081_v32, %v1740_v59 }
 0x1bc   : > { %1816 = vst [vmem:[%s3067_s29 + $0xc8] sm:$0xff] %v1784_v41  ;;  %v2084_v25 = vadd.f32 %v2083_v47, %v1742_v21  ;;  %v1103_v63 = vpop.f32.mrb[28].mxu1  ;;  %v1747_v34 = vpop.f32.mrb[28].mxu0 }
 0x1bd   : > { %v1785_v10 = vmax.f32 %v2082_v15, 0.0  ;;  %v2085_v50 = vadd.f32 %v1103_v63, %v321_v38  ;;  %v1105_v30 = vpop.f32.mrb[29].mxu1  ;;  %v1749_v27 = vpop.f32.mrb[29].mxu0 }
 0x1be   : > { %v1786_v62 = vmax.f32 %v2084_v25, 0.0  ;;  %v2087_v54 = vadd.f32 %v1105_v30, %v321_v38 }
 0x1bf   : > { %1817 = vst [vmem:[%s3067_s29 + $0xd0] sm:$0xff] %v1785_v10  ;;  %v2086_v44 = vadd.f32 %v2085_v50, %v1747_v34 }
 0x1c0   : > { %1818 = vst [vmem:[%s3067_s29 + $0xd8] sm:$0xff] %v1786_v62  ;;  %v2088_v9 = vadd.f32 %v2087_v54, %v1749_v27  ;;  %v1111_v53 = vpop.f32.mrb[30].mxu1  ;;  %v1754_v1 = vpop.f32.mrb[30].mxu0 }
 0x1c1   : > { %v1787_v29 = vmax.f32 %v2086_v44, 0.0  ;;  %v2089_v45 = vadd.f32 %v1111_v53, %v326_v31  ;;  %v1113_v35 = vpop.f32.mrb[31].mxu1  ;;  %v1756_v4 = vpop.f32.mrb[31].mxu0 }
 0x1c2   : > { %v1788_v42 = vmax.f32 %v2088_v9, 0.0  ;;  %v2091_v43 = vadd.f32 %v1113_v35, %v326_v31 }
 0x1c3   : > { %1819 = vst [vmem:[%s3067_s29 + $0xe0] sm:$0xff] %v1787_v29  ;;  %v2090_v3 = vadd.f32 %v2089_v45, %v1754_v1 }
 0x1c4   : > { %1820 = vst [vmem:[%s3067_s29 + $0xe8] sm:$0xff] %v1788_v42  ;;  %v2092_v55 = vadd.f32 %v2091_v43, %v1756_v4 }
 0x1c5   : > { %v1789_v56 = vmax.f32 %v2090_v3, 0.0 }
 0x1c6   : > { %v1790_v57 = vmax.f32 %v2092_v55, 0.0 }
 0x1c7   : > { %1821 = vst [vmem:[%s3067_s29 + $0xf0] sm:$0xff] %v1789_v56 }
 0x1c8   : > { %1822 = vst [vmem:[%s3067_s29 + $0xf8] sm:$0xff] %v1790_v57 }
 0x1c9   : > { %2295 = shalt.err (!%p2292_p5)
}
 0x1ca   : > { %s2296_s18 = scalar_lea.hbm %s3104_s7, 4096  ;;  %s2300_s23 = scalar_lea.hbm %s3161_s3, 8192 }
 0x1cb   : > { %p2297_p6 = scmp.ne.s32.totalorder %s3104_s7, %s2296_s18  ;;  %p2301_p10 = scmp.lt.u32.totalorder %s3104_s7, %s3161_s3 }
 0x1cc   : > { %p2302_p11 = scmp.lt.u32.totalorder %s2300_s23, %s2296_s18  ;;  %p2304_p13 = scmp.lt.u32.totalorder %s2296_s18, %s3104_s7 }
 0x1cd   : > { %p2298_p7 = pnand %p2297_p6, %p2427_p4 }
 0x1ce   : > { %p2303_p12 = por %p2302_p11, %p2301_p10 }
 0x1cf   : > { %p2299_p9 = pneg %p2298_p7 }
 0x1d0   : > { %p2305_p0 = por %p2304_p13, %p2303_p12 }
 0x1d2   : > { %p2306_p1 = pnand %p2305_p0, %p2299_p9 }
 0x1d4   : > { %2309 = shalt.err (!%p2306_p1)
}
 0x1d5   : > { %s2365_s28 = smov 256   ;;  %s2366_s29 = smov 16  }
 0x1d6   : > { %2221 = dma.vmem_to_hbm [thread:$0]  (%p2427_p4), %s3106_s4, 4096, %s3104_s7, %s3112_s15, %s2365_s28, %s2365_s28, %s2366_s29  }
 0x1d7 PF: > { %p2227_p2 = scmp.ge.s32.totalorder %s2360_s17, 2  ;;  %s1854_s30 = sand.u32 1, %s2340_s12  }
 0x1d8   : > { %s1855_s5 = scalar_lea.sflag [#allocation3], %s1854_s30 }
 0x1d9   : > { %p2224_p3 = pnand %p2227_p2, %p2434_p8 }
 0x1db   : > { %2335 = dma.done.wait (!%p2224_p3), %s1855_s5, 4096  }
 0x1dc   : > { %2337 = vsyncadd (!%p2224_p3), %s1855_s5, 4294963200  ;;  %s16_s17 = sadd.s32 1, %s2360_s17   ;;  %s3193_s12 = smov %s2344_s13 }
 0x1dd   : > { %p13_p5 = scmp.ge.s32.totalorder %s16_s17, 4   ;;  %s3194_s13 = smov %s2348_s14 }
 0x1de   : > { %s3195_s14 = smov %s2440_s25  ;;  %s3196_s15 = smov %s2356_s16 }
 0x1df   : > { %s3197_s16 = smov %s3199_s20  ;;  %15 = sbr.rel (!%p13_p5) target bundleno = 4 (0x4), region = 67 }
 0x1e6   :  { %1860 = vsyncpa [#allocation3], 1 }
 0x1e7   :  { %1862 = vsyncpa [#allocation3 + $0x1], 1 }

</bundles_post_ra>
